<compile_context>
chip_gen: v5e
topology: v5e:2x2
jax: 0.10.0
libtpu: 0.0.40
codegen_flags: <defaults>
</compile_context>

<pallas_src>
import functools
import math

import jax
import jax.numpy as jnp
from jax import lax
from jax.experimental import pallas as pl
from jax.experimental.pallas import tpu as pltpu

_LANES = 128
_SUBLANES = 8


# -------------------------------- kernel ----------------------------------- #
def _calf_kernel(gt_ref, pred_ref, out_ref, *, K, log_miss, log_one_minus_hit,
                 block_rows, need_mask, valid_rows_last):
    K0, K1, K2, K3 = K

    gt = gt_ref[...].astype(jnp.float32)
    p = pred_ref[...].astype(jnp.float32)
    pred = 1.0 - p                      # matches `pred_score = 1.0 - pred_score`

    # 5 monotone predicates; case masks derived with xor/or (K0<K1<0<K2<K3, so
    # lt_k0 ⊆ lt_k1, lt_0 ⊆ lt_k2 ⊆ lt_k3).  Half-open [a, b) semantics match
    # the torch.sign-based Up/DownStep helpers exactly.
    lt_k0 = gt < K0
    lt_k1 = gt < K1
    lt_0 = gt < 0.0
    lt_k2 = gt < K2
    lt_k3 = gt < K3

    m2 = jnp.logical_xor(lt_k1, lt_k0)          # [K0, K1)
    m4 = jnp.logical_xor(lt_k2, lt_0)           # [0,  K2)
    m5 = jnp.logical_xor(lt_k3, lt_k2)          # [K2, K3)
    # everything except the zero-contribution interval [K1, 0):
    any_case = jnp.logical_or(lt_k1, jnp.logical_not(lt_0))

    # Blended log arguments.  PartialIdentity's clamp is the identity inside
    # each case's own mask, so the unclamped form is exact under the select.
    arg2 = pred + p * ((gt - K0) * (1.0 / (K1 - K0)))
    arg4 = p + pred * (gt * (1.0 / K2))
    arg5 = pred + p * ((gt - K3) * (1.0 / (K2 - K3)))

    log_arg = jnp.where(m2, arg2, jnp.where(m4, arg4, jnp.where(m5, arg5, pred)))
    offset = jnp.where(m4, log_one_minus_hit, log_miss)

    val = jnp.maximum(0.0, offset - jnp.log(log_arg))   # single EUP log pass
    contrib = jnp.where(any_case, val, 0.0)              # select: no 0*inf NaN

    # Fold (block_rows, 128) -> (8, 128) with VPU adds only; each grid step
    # owns its output block, so the grid axis stays fully parallel.
    def fold(x):
        return jnp.sum(
            x.reshape(block_rows // _SUBLANES, _SUBLANES, _LANES), axis=0)

    if not need_mask:
        out_ref[0] = fold(contrib)
    else:
        # Only the LAST block pays the row-validity mask (ragged edge rows
        # contain unspecified VMEM data; zeroed here via select, NaN-safe).
        is_last = pl.program_id(0) == pl.num_programs(0) - 1

        @pl.when(is_last)
        def _():
            row = lax.broadcasted_iota(jnp.int32, contrib.shape, 0)
            out_ref[0] = fold(jnp.where(row < valid_rows_last, contrib, 0.0))

        @pl.when(jnp.logical_not(is_last))
        def _():
            out_ref[0] = fold(contrib)


# --------------------------- plain-JAX epilogue ----------------------------- #
def _loss_sum_jax(gt, p, K, log_miss, log_one_minus_hit):
    """Same math as the kernel, for the <128-element flat-length remainder."""
    gt = gt.astype(jnp.float32)
    p = p.astype(jnp.float32)
    pred = 1.0 - p
    K0, K1, K2, K3 = K
    m2 = jnp.logical_and(gt >= K0, gt < K1)
    m4 = jnp.logical_and(gt >= 0.0, gt < K2)
    m5 = jnp.logical_and(gt >= K2, gt < K3)
    any_case = jnp.logical_or(gt < K1, gt >= 0.0)
    arg2 = pred + p * ((gt - K0) / (K1 - K0))
    arg4 = p + pred * (gt / K2)
    arg5 = pred + p * ((gt - K3) / (K2 - K3))
    log_arg = jnp.where(m2, arg2, jnp.where(m4, arg4, jnp.where(m5, arg5, pred)))
    offset = jnp.where(m4, log_one_minus_hit, log_miss)
    val = jnp.maximum(0.0, offset - jnp.log(log_arg))
    return jnp.sum(jnp.where(any_case, val, 0.0))


# -------------------------------- wrapper ----------------------------------- #
def _grid_semantics(use_core_parallel):
    """'parallel' everywhere; CORE_PARALLEL on v7x (2 TCs/chip) when available."""
    if use_core_parallel is None:
        try:
            kind = jax.devices()[0].device_kind.lower()
        except Exception:
            kind = ""
        use_core_parallel = "v7" in kind
    core_par = getattr(pltpu, "CORE_PARALLEL", None)
    if use_core_parallel and core_par is not None:
        return (core_par,)
    return ("parallel",)


def context_aware_loss(gt_label, pred_score, K, hit_radius=0.1, miss_radius=0.9,
                       max_block_rows=2048, use_core_parallel=None):
    """Pallas implementation of ContextAwareLoss.forward.

    gt_label, pred_score: same shape, any rank (any float dtype).
    K: tuple of 4 python floats (static), K[0] < K[1] < 0 < K[2] < K[3]."""
    assert gt_label.shape == pred_score.shape
    K = tuple(float(k) for k in K)
    log_miss = math.log(float(miss_radius))
    log_1mh = math.log(1.0 - float(hit_radius))

    n_elems = int(math.prod(gt_label.shape)) if gt_label.shape else 1

    gt_flat = gt_label.reshape(-1)
    pr_flat = pred_score.reshape(-1)

    R = n_elems // _LANES
    rem = n_elems - R * _LANES

    tail_sum = None
    if rem:
        # <128 trailing elements: tiny pure-JAX epilogue.  (In this rare case
        # the bulk slice below does cost one copy; when n_elems % 128 == 0 the
        # kernel consumes the original buffers with zero copies.)
        tail_sum = _loss_sum_jax(gt_flat[R * _LANES:], pr_flat[R * _LANES:],
                                 K, log_miss, log_1mh)
        gt_main = gt_flat[:R * _LANES]
        pr_main = pr_flat[:R * _LANES]
    else:
        gt_main = gt_flat
        pr_main = pr_flat

    if R == 0:
        return tail_sum if tail_sum is not None else jnp.zeros((), jnp.float32)

    # Lane-dense view: contiguous reshape, no data movement.
    gt2 = gt_main.reshape(R, _LANES)
    pr2 = pr_main.reshape(R, _LANES)

    block_rows = min(int(max_block_rows), pl.cdiv(R, _SUBLANES) * _SUBLANES)
    n_blocks = pl.cdiv(R, block_rows)
    covered_rows = n_blocks * block_rows
    need_mask = covered_rows != R                      # ragged last block only
    valid_rows_last = R - (n_blocks - 1) * block_rows

    kernel = functools.partial(
        _calf_kernel,
        K=K,
        log_miss=log_miss,
        log_one_minus_hit=log_1mh,
        block_rows=block_rows,
        need_mask=need_mask,
        valid_rows_last=valid_rows_last,
    )

    partials = pl.pallas_call(
        kernel,
        out_shape=jax.ShapeDtypeStruct((n_blocks, _SUBLANES, _LANES), jnp.float32),
        grid=(n_blocks,),
        in_specs=[
            pl.BlockSpec((block_rows, _LANES), lambda i: (i, 0)),
            pl.BlockSpec((block_rows, _LANES), lambda i: (i, 0)),
        ],
        out_specs=pl.BlockSpec((1, _SUBLANES, _LANES), lambda i: (i, 0, 0)),
        compiler_params=pltpu.CompilerParams(
            dimension_semantics=_grid_semantics(use_core_parallel),
            vmem_limit_bytes=32 * 1024 * 1024,
        ),
    )(gt2, pr2)

    result = jnp.sum(partials)
    if tail_sum is not None:
        result = result + tail_sum
    return result


# --------------------------- pure-JAX reference ----------------------------- #
def _down_step(x, a):
    return jnp.maximum(0.0 * x, jnp.sign(a - x))


def _up_step(x, a):
    return 1.0 - _down_step(x, a)


def _interval(x, a, b):
    return _up_step(x, a) * _down_step(x, b)


def _partial_identity(x, a, b):
    return jnp.minimum(jnp.maximum(x, 0.0 * x + a), 0.0 * x + b)


def _reference_loss(gt, p, K, hit_radius=0.1, miss_radius=0.9):
    gt = gt.astype(jnp.float32)
    p = p.astype(jnp.float32)
    zeros = jnp.zeros_like(p)
    pred = 1.0 - p
    K0, K1, K2, K3 = [float(k) for k in K]
    c1 = _down_step(gt, K0) * jnp.maximum(
        zeros, -jnp.log(pred) + jnp.log(zeros + miss_radius))
    c2 = _interval(gt, K0, K1) * jnp.maximum(
        zeros, -jnp.log(pred + (1.0 - pred) * (_partial_identity(gt, K0, K1) - K0) / (K1 - K0))
        + jnp.log(zeros + miss_radius))
    c3 = _interval(gt, K1, 0.0) * zeros
    c4 = _interval(gt, 0.0, K2) * jnp.maximum(
        zeros, -jnp.log(1.0 - pred + pred * (_partial_identity(gt, 0.0, K2)) / K2)
        + jnp.log(zeros + 1.0 - hit_radius))
    c5 = _interval(gt, K2, K3) * jnp.maximum(
        zeros, -jnp.log(pred + (1.0 - pred) * (_partial_identity(gt, K2, K3) - K3) / (K2 - K3))
        + jnp.log(zeros + miss_radius))
    c6 = _up_step(gt, K3) * jnp.maximum(
        zeros, -jnp.log(pred) + jnp.log(zeros + miss_radius))
    return jnp.sum(c1 + c2 + c3 + c4 + c5 + c6)


# ---------------------------------- main ------------------------------------ #
if __name__ == "__main__":
    # Deterministic, in-script "parameters" of the module:
    K = (-2.0, -1.0, 1.0, 2.0)   # K[0] < K[1] < 0 < K[2] < K[3]
    hit_radius = 0.1
    miss_radius = 0.9

    # Small shapes consistent with the forward: (batch=2, seq=8, classes=16)
    key = jax.random.PRNGKey(0)
    k1, k2 = jax.random.split(key)
    shape = (2, 8, 16)
    gt_label = jax.random.uniform(k1, shape, jnp.float32, minval=-3.0, maxval=3.0)
    pred_score = jax.random.uniform(k2, shape, jnp.float32, minval=0.05, maxval=0.95)

    loss = context_aware_loss(gt_label, pred_score, K, hit_radius, miss_radius)
    loss = jax.block_until_ready(loss)

    ref = _reference_loss(gt_label, pred_score, K, hit_radius, miss_radius)
    assert jnp.allclose(loss, ref, rtol=1e-5, atol=1e-5), (loss, ref)

    print("KERNEL_OK")
</pallas_src>

<mosaic_0001>
module attributes {stable_mosaic.version = 11 : i64} {
  func.func @_calf_kernel(%arg0: i32, %arg1: memref<8x128xf32, #tpu.memory_space<vmem>>, %arg2: memref<8x128xf32, #tpu.memory_space<vmem>>, %arg3: memref<1x8x128xf32, #tpu.memory_space<vmem>>) attributes {dimension_semantics = [#tpu.dimension_semantics<parallel>], iteration_bounds = array<i64: 1>, scalar_prefetch = 0 : i64, scratch_operands = 0 : i64, tpu.core_type = #tpu.core_type<tc>, window_params = [{transform_indices = @transform_0, window_bounds = array<i64: 8, 128>}, {transform_indices = @transform_1, window_bounds = array<i64: 8, 128>}, {transform_indices = @transform_2, window_bounds = array<i64: 1, 8, 128>}]} {
    %c0 = arith.constant 0 : index
    %c0_0 = arith.constant 0 : index
    %0 = vector.load %arg1[%c0, %c0_0] : memref<8x128xf32, #tpu.memory_space<vmem>>, vector<8x128xf32>
    %c0_1 = arith.constant 0 : index
    %c0_2 = arith.constant 0 : index
    %1 = vector.load %arg2[%c0_1, %c0_2] : memref<8x128xf32, #tpu.memory_space<vmem>>, vector<8x128xf32>
    %cst = arith.constant 1.000000e+00 : f32
    %2 = vector.broadcast %cst : f32 to vector<8x128xf32>
    %3 = arith.subf %2, %1 : vector<8x128xf32>
    %cst_3 = arith.constant -2.000000e+00 : f32
    %4 = vector.broadcast %cst_3 : f32 to vector<8x128xf32>
    %5 = arith.cmpf olt, %0, %4 : vector<8x128xf32>
    %cst_4 = arith.constant -1.000000e+00 : f32
    %6 = vector.broadcast %cst_4 : f32 to vector<8x128xf32>
    %7 = arith.cmpf olt, %0, %6 : vector<8x128xf32>
    %cst_5 = arith.constant 0.000000e+00 : f32
    %8 = vector.broadcast %cst_5 : f32 to vector<8x128xf32>
    %9 = arith.cmpf olt, %0, %8 : vector<8x128xf32>
    %cst_6 = arith.constant 1.000000e+00 : f32
    %10 = vector.broadcast %cst_6 : f32 to vector<8x128xf32>
    %11 = arith.cmpf olt, %0, %10 : vector<8x128xf32>
    %cst_7 = arith.constant 2.000000e+00 : f32
    %12 = vector.broadcast %cst_7 : f32 to vector<8x128xf32>
    %13 = arith.cmpf olt, %0, %12 : vector<8x128xf32>
    %14 = arith.xori %7, %5 : vector<8x128xi1>
    %15 = arith.xori %11, %9 : vector<8x128xi1>
    %16 = arith.xori %13, %11 : vector<8x128xi1>
    %cst_8 = arith.constant dense<true> : vector<8x128xi1>
    %17 = arith.xori %9, %cst_8 : vector<8x128xi1>
    %18 = arith.ori %7, %17 : vector<8x128xi1>
    %cst_9 = arith.constant -2.000000e+00 : f32
    %19 = vector.broadcast %cst_9 : f32 to vector<8x128xf32>
    %20 = arith.subf %0, %19 : vector<8x128xf32>
    %cst_10 = arith.constant 1.000000e+00 : f32
    %21 = vector.broadcast %cst_10 : f32 to vector<8x128xf32>
    %22 = arith.mulf %20, %21 : vector<8x128xf32>
    %23 = arith.mulf %1, %22 : vector<8x128xf32>
    %24 = arith.addf %3, %23 : vector<8x128xf32>
    %cst_11 = arith.constant 1.000000e+00 : f32
    %25 = vector.broadcast %cst_11 : f32 to vector<8x128xf32>
    %26 = arith.mulf %0, %25 : vector<8x128xf32>
    %27 = arith.mulf %3, %26 : vector<8x128xf32>
    %28 = arith.addf %1, %27 : vector<8x128xf32>
    %cst_12 = arith.constant 2.000000e+00 : f32
    %29 = vector.broadcast %cst_12 : f32 to vector<8x128xf32>
    %30 = arith.subf %0, %29 : vector<8x128xf32>
    %cst_13 = arith.constant -1.000000e+00 : f32
    %31 = vector.broadcast %cst_13 : f32 to vector<8x128xf32>
    %32 = arith.mulf %30, %31 : vector<8x128xf32>
    %33 = arith.mulf %1, %32 : vector<8x128xf32>
    %34 = arith.addf %3, %33 : vector<8x128xf32>
    %35 = arith.select %16, %34, %3 : vector<8x128xi1>, vector<8x128xf32>
    %36 = arith.select %15, %28, %35 : vector<8x128xi1>, vector<8x128xf32>
    %37 = arith.select %14, %24, %36 : vector<8x128xi1>, vector<8x128xf32>
    %cst_14 = arith.constant -0.105360515 : f32
    %cst_15 = arith.constant -0.105360515 : f32
    %38 = vector.broadcast %cst_14 : f32 to vector<8x128xf32>
    %39 = vector.broadcast %cst_15 : f32 to vector<8x128xf32>
    %40 = arith.select %15, %38, %39 : vector<8x128xi1>, vector<8x128xf32>
    %41 = math.log %37 : vector<8x128xf32>
    %42 = arith.subf %40, %41 : vector<8x128xf32>
    %cst_16 = arith.constant 0.000000e+00 : f32
    %43 = vector.broadcast %cst_16 : f32 to vector<8x128xf32>
    %44 = arith.maximumf %43, %42 : vector<8x128xf32>
    %cst_17 = arith.constant 0.000000e+00 : f32
    %45 = vector.broadcast %cst_17 : f32 to vector<8x128xf32>
    %46 = arith.select %18, %44, %45 : vector<8x128xi1>, vector<8x128xf32>
    %c0_i32 = arith.constant 0 : i32
    %47 = arith.cmpi eq, %arg0, %c0_i32 : i32
    %48 = arith.extui %47 : i1 to i32
    %c0_i32_18 = arith.constant 0 : i32
    %49 = arith.cmpi ne, %48, %c0_i32_18 : i32
    scf.if %49 {
      %53 = tpu.iota {dimensions = array<i32: 0>} : vector<8x128xi32>
      %c2_i32 = arith.constant 2 : i32
      %54 = vector.broadcast %c2_i32 : i32 to vector<8x128xi32>
      %55 = arith.cmpi slt, %53, %54 : vector<8x128xi32>
      %cst_20 = arith.constant 0.000000e+00 : f32
      %56 = vector.broadcast %cst_20 : f32 to vector<8x128xf32>
      %57 = arith.select %55, %46, %56 : vector<8x128xi1>, vector<8x128xf32>
      %58 = vector.shape_cast %57 : vector<8x128xf32> to vector<1x8x128xf32>
      %cst_21 = arith.constant dense<0.000000e+00> : vector<8x128xf32>
      %59 = vector.multi_reduction <add>, %58, %cst_21 [0] : vector<1x8x128xf32> to vector<8x128xf32>
      %c0_22 = arith.constant 0 : index
      %c0_23 = arith.constant 0 : index
      %c0_24 = arith.constant 0 : index
      %60 = vector.load %arg3[%c0_22, %c0_23, %c0_24] : memref<1x8x128xf32, #tpu.memory_space<vmem>>, vector<1x8x128xf32>
      %61 = vector.shape_cast %60 : vector<1x8x128xf32> to vector<8x128xf32>
      %62 = vector.shape_cast %59 : vector<8x128xf32> to vector<1x8x128xf32>
      tpu.vector_store %arg3[%c0_22, %c0_23, %c0_24], %62 {strides = array<i32>} : memref<1x8x128xf32, #tpu.memory_space<vmem>>, vector<1x8x128xf32>,
    } else {
    }
    %true = arith.constant true
    %50 = arith.xori %47, %true : i1
    %51 = arith.extui %50 : i1 to i32
    %c0_i32_19 = arith.constant 0 : i32
    %52 = arith.cmpi ne, %51, %c0_i32_19 : i32
    scf.if %52 {
      %53 = vector.shape_cast %46 : vector<8x128xf32> to vector<1x8x128xf32>
      %cst_20 = arith.constant dense<0.000000e+00> : vector<8x128xf32>
      %54 = vector.multi_reduction <add>, %53, %cst_20 [0] : vector<1x8x128xf32> to vector<8x128xf32>
      %c0_21 = arith.constant 0 : index
      %c0_22 = arith.constant 0 : index
      %c0_23 = arith.constant 0 : index
      %55 = vector.load %arg3[%c0_21, %c0_22, %c0_23] : memref<1x8x128xf32, #tpu.memory_space<vmem>>, vector<1x8x128xf32>
      %56 = vector.shape_cast %55 : vector<1x8x128xf32> to vector<8x128xf32>
      %57 = vector.shape_cast %54 : vector<8x128xf32> to vector<1x8x128xf32>
      tpu.vector_store %arg3[%c0_21, %c0_22, %c0_23], %57 {strides = array<i32>} : memref<1x8x128xf32, #tpu.memory_space<vmem>>, vector<1x8x128xf32>,
    } else {
    }
    return
  }
  func.func @transform_0(%arg0: i32) -> (i32, i32) {
    %c0_i32 = arith.constant 0 : i32
    %c0_i32_0 = arith.constant 0 : i32
    return %arg0, %c0_i32 : i32, i32
  }
  func.func @transform_1(%arg0: i32) -> (i32, i32) {
    %c0_i32 = arith.constant 0 : i32
    %c0_i32_0 = arith.constant 0 : i32
    return %arg0, %c0_i32 : i32, i32
  }
  func.func @transform_2(%arg0: i32) -> (i32, i32, i32) {
    %c0_i32 = arith.constant 0 : i32
    %c0_i32_0 = arith.constant 0 : i32
    %c0_i32_1 = arith.constant 0 : i32
    return %arg0, %c0_i32, %c0_i32_0 : i32, i32, i32
  }
}

</mosaic_0001>

<bundles_post_ra>
// kernel: tpu_custom_call.1
= control target key start
LH: loop header
LB: loop body
LE: loop exit
PB: predicated region body
PF: predicated region fallthrough
CT: control target
= control target key end

     0   :  { %7 = vsyncpa [#allocation3], 0  ;;  %s230_s0 = inlined_call_operand.hbm [shape: f32[2,128], index: 0, kind: input, shape index: {}]   ;;  %s231_s1 = inlined_call_operand.hbm [shape: f32[2,128], index: 1, kind: input, shape index: {}]   ;;  %s232_s2 = inlined_call_operand.hbm [shape: f32[1,8,128], index: 2, kind: output, shape index: {}]  }
   0x1   :  { %8 = vsyncpa [#allocation6], 0 }
   0x2   :  { %9 = vsyncpa [#allocation4], 0 }
   0x3   :  { %13 = vsyncadd [#allocation3], 96  ;;  %s14_s11 = sshll.u32 %s230_s0, 4  ;;  %s196_s12 = smov [#allocation2]   ;;  %s15_s11 = int_to_ptr.hbm [resolvable:$true] %s14_s11 }
   0x4   :  { %s16_s13 = sshll.u32 %s196_s12, 4  ;;  %s197_s14 = smov 32   ;;  %s17_s13 = int_to_ptr.vmem [resolvable:$true] %s16_s13 }
   0x5   :  { %s198_s15 = smov 2  }
   0x6   :  { %22 = dma.hbm_to_vmem [thread:$0]  %s15_s11, 32, %s17_s13, [#allocation3], %s197_s14, %s197_s14, %s198_s15  }
   0x7   :  { %26 = vsyncadd [#allocation6], 96  ;;  %s27_s18 = sshll.u32 %s231_s1, 4  ;;  %s199_s19 = smov [#allocation5]   ;;  %s28_s18 = int_to_ptr.hbm [resolvable:$true] %s27_s18 }
   0x8   :  { %s29_s20 = sshll.u32 %s199_s19, 4  ;;  %s30_s20 = int_to_ptr.vmem [resolvable:$true] %s29_s20 }
   0x9   :  { %35 = dma.hbm_to_vmem [thread:$0]  %s28_s18, 32, %s30_s20, [#allocation6], %s197_s14, %s197_s14, %s198_s15  }
   0xa   :  { %190 = dma.done.wait [#allocation3], 128  }
   0xb   :  { %191 = vsyncadd [#allocation3], 4294967168 }
   0xc   :  { %192 = dma.done.wait [#allocation6], 128  }
   0xd   :  { %193 = vsyncadd [#allocation6], 4294967168  ;;  %v44_v0 = vld [vmem:[#allocation2] sm:$0xff]  ;;  %v45_v1 = vld [vmem:[#allocation5] sm:$0xff]  ;;  %v78_v15 = vlaneseq  ;;  %vm200_vm8 = vmmov 1   ;;  %s201_s0 = smov [#allocation7]  }
   0xe   :  { %v46_v2 = vsub.f32 1.0, %v45_v1  ;;  %v108_v3 = vadd.f32 2.0, %v44_v0  ;;  %v109_v4 = vadd.f32 -2.0, %v44_v0  ;;  %vm50_vm0 = vcmp.lt.f32.partialorder %v44_v0, 1.0  ;;  %s95_s1 = sshll.u32 %s201_s0, 4  ;;  %s97_s23 = sshll.u32 %s232_s2, 4  ;;  %s96_s1 = int_to_ptr.vmem [resolvable:$true] %s95_s1  ;;  %s98_s23 = int_to_ptr.hbm [resolvable:$true] %s97_s23 }
   0xf   :  { %vm51_vm1 = vcmp.lt.f32.partialorder %v44_v0, 2.0  ;;  %vm49_vm2 = vcmp.lt.f32.partialorder %v44_v0, 0.0  ;;  %vm47_vm3 = vcmp.lt.f32.partialorder %v44_v0, -2.0  ;;  %vm48_vm4 = vcmp.lt.f32.partialorder %v44_v0, -1.0 }
  0x10   :  { %v60_v5 = vmul.f32 %v46_v2, %v44_v0  ;;  %v58_v6 = vmul.f32 %v108_v3, %v45_v1  ;;  %v63_v7 = vmul.f32 -1.0, %v109_v4  ;;  %vm54_vm5 = vmxor %vm51_vm1, %vm50_vm0  ;;  %v79_v18 = vshrl.u32 %v78_v15, 7 }
  0x11   :  { %vm53_vm6 = vmxor %vm50_vm0, %vm49_vm2 }
  0x12   :  { %v64_v8 = vmul.f32 %v63_v7, %v45_v1  ;;  %v61_v9 = vadd.f32 %v60_v5, %v45_v1  ;;  %v59_v10 = vadd.f32 %v58_v6, %v46_v2  ;;  %vm52_vm7 = vmxor %vm48_vm4, %vm47_vm3  ;;  %vm80_vm11 = vcmp.lt.s32.totalorder %v79_v18, 2 }
  0x13   :  { %vm55_vm9 = vmxor %vm49_vm2, %vm200_vm8 }
  0x14   :  { %v65_v11 = vadd.f32 %v64_v8, %v46_v2  ;;  %vm56_vm10 = vmor %vm48_vm4, %vm55_vm9 }
  0x16   :  { %v66_v12 = vsel %vm54_vm5, %v65_v11, %v46_v2 }
  0x17   :  { %v67_v13 = vsel %vm53_vm6, %v61_v9, %v66_v12 }
  0x18   :  { %v68_v14 = vsel %vm52_vm7, %v59_v10, %v67_v13 }
  0x19   :  { %116 = vlog2.f32 %v68_v14 }
  0x1f   :  { %v117_v16 = vpop.eup %116 }
  0x20   :  { %v70_v17 = vmul.f32 0.6931472, %v117_v16 }
  0x22   :  { %v71_v19 = vsub.f32 -0.105360515, %v70_v17 }
  0x24   :  { %v72_v20 = vmax.f32 %v71_v19, 0.0 }
  0x26   :  { %v73_v21 = vsel %vm56_vm10, %v72_v20, 0.0 }
  0x27   :  { %v81_v22 = vsel %vm80_vm11, %v73_v21, 0.0 }
  0x28   :  { %83 = vst [vmem:[#allocation7] sm:$0xff] %v81_v22 }
  0x29   :  { %100 = dma.vmem_to_hbm [thread:$0]  %s96_s1, 128, %s98_s23, [#allocation4]  }
  0x2a   :  { %194 = dma.done.wait [#allocation4], 128  }
  0x2b   :  { %195 = vsyncadd [#allocation4], 4294967168 }
  0x2c   :  { %105 = vsyncpa [#allocation3], 1 }
  0x2d   :  { %106 = vsyncpa [#allocation6], 1 }
  0x2e   :  { %107 = vsyncpa [#allocation4], 1 }

</bundles_post_ra>
